<compile_context>
chip_gen: v6e
topology: v6e:2x2x1
jax: 0.10.0
libtpu: 0.0.40
codegen_flags: <defaults>
</compile_context>

<pallas_src>
import functools

import jax
import jax.numpy as jnp
from jax.experimental import pallas as pl
from jax.experimental.pallas import tpu as pltpu


def _mixloss_kernel(p_ref, t_ref, dice_out_ref, bce_out_ref,
                    pt_acc, s_acc, bce_acc):
    # p_ref, t_ref: (row_tile, hw_chunk) VMEM tiles.
    # dice_out_ref, bce_out_ref: (8, 128) lane-dense per-row-tile partials.
    # pt_acc, s_acc, bce_acc: (row_tile, 1) f32 VMEM accumulators.
    k = pl.program_id(1)

    @pl.when(k == 0)
    def _init():
        pt_acc[...] = jnp.zeros_like(pt_acc)
        s_acc[...] = jnp.zeros_like(s_acc)
        bce_acc[...] = jnp.zeros_like(bce_acc)

    p = p_ref[...].astype(jnp.float32)
    t = t_ref[...].astype(jnp.float32)

    # Single fused pass over the tile: dice sums + BCE sum, lane-reduce only.
    # PyTorch BCELoss clamps each log term at -100 (covers padded p == 0).
    log_p = jnp.maximum(jnp.log(p), -100.0)
    log_1mp = jnp.maximum(jnp.log(1.0 - p), -100.0)
    bce_elem = -(t * log_p + (1.0 - t) * log_1mp)

    pt_acc[...] += jnp.sum(p * t, axis=-1, keepdims=True)
    s_acc[...] += jnp.sum(p + t, axis=-1, keepdims=True)
    bce_acc[...] += jnp.sum(bce_elem, axis=-1, keepdims=True)

    @pl.when(k == pl.num_programs(1) - 1)
    def _finalize():
        # BinaryDiceLoss(smooth=1, p=1): per row 1 - (2*sum(p*t)+1)/(sum(p+t)+1).
        # Padded (all-zero) rows give 1 - 1/1 = 0, i.e. contribute nothing.
        dice_row = 1.0 - (2.0 * pt_acc[...] + 1.0) / (s_acc[...] + 1.0)
        dice_partial = jnp.sum(dice_row, axis=0, keepdims=True)       # (1, 1)
        bce_partial = jnp.sum(bce_acc[...], axis=0, keepdims=True)    # (1, 1)
        dice_out_ref[...] = jnp.broadcast_to(dice_partial, dice_out_ref.shape)
        bce_out_ref[...] = jnp.broadcast_to(bce_partial, bce_out_ref.shape)


def _round_up(x, m):
    return (x + m - 1) // m * m


@functools.partial(jax.jit, static_argnames=("hw_chunk_max", "row_tile_max"))
def mix_loss(predict, target, *, hw_chunk_max=2048, row_tile_max=128):
    """predict, target: [N, C, *], predict values in (0, 1) (probabilities)."""
    assert predict.shape == target.shape, "predict & target shape do not match"
    n, c = predict.shape[0], predict.shape[1]
    nc = n * c
    hw = 1
    for d in predict.shape[2:]:
        hw *= d

    p2 = predict.reshape(nc, hw)
    t2 = target.reshape(nc, hw)

    # Tile sizing: row tile multiple of 8, hw chunk multiple of 128 (>=512
    # preferred).  Max tile 128x2048 f32 = 1 MiB/input => 4 MiB total with
    # double buffering: safe for v5e/v6e/v7x scoped-VMEM defaults.
    row_tile = min(_round_up(nc, 8), row_tile_max)
    nc_pad = _round_up(nc, row_tile)
    hw_chunk = min(_round_up(hw, 128), hw_chunk_max)
    hw_pad = _round_up(hw, hw_chunk)

    if (nc_pad, hw_pad) != (nc, hw):
        # Zero padding contributes exactly 0 to every accumulated sum.
        p2 = jnp.pad(p2, ((0, nc_pad - nc), (0, hw_pad - hw)))
        t2 = jnp.pad(t2, ((0, nc_pad - nc), (0, hw_pad - hw)))

    n_row_tiles = nc_pad // row_tile
    n_chunks = hw_pad // hw_chunk

    dice_p, bce_p = pl.pallas_call(
        _mixloss_kernel,
        out_shape=(
            jax.ShapeDtypeStruct((n_row_tiles, 8, 128), jnp.float32),
            jax.ShapeDtypeStruct((n_row_tiles, 8, 128), jnp.float32),
        ),
        grid_spec=pltpu.PrefetchScalarGridSpec(
            num_scalar_prefetch=0,
            grid=(n_row_tiles, n_chunks),
            in_specs=[
                pl.BlockSpec((row_tile, hw_chunk), lambda i, k: (i, k)),
                pl.BlockSpec((row_tile, hw_chunk), lambda i, k: (i, k)),
            ],
            out_specs=[
                pl.BlockSpec((None, 8, 128), lambda i, k: (i, 0, 0)),
                pl.BlockSpec((None, 8, 128), lambda i, k: (i, 0, 0)),
            ],
            scratch_shapes=[
                pltpu.VMEM((row_tile, 1), jnp.float32),   # sum(p*t) per row
                pltpu.VMEM((row_tile, 1), jnp.float32),   # sum(p+t) per row
                pltpu.VMEM((row_tile, 1), jnp.float32),   # BCE sum per row
            ],
        ),
        compiler_params=pltpu.CompilerParams(
            dimension_semantics=("parallel", "arbitrary")),
    )(p2, t2)

    # Tiny final reduction + divides (true counts, not padded counts).
    dice_loss = jnp.sum(dice_p[:, 0, 0]) / nc       # mean over all (n, c) rows
    bce_loss = jnp.sum(bce_p[:, 0, 0]) / (nc * hw)  # mean over all elements
    return dice_loss + bce_loss


def _mix_loss_ref(predict, target):
    """Pure-JAX reference mirroring the PyTorch module."""
    n, c = predict.shape[0], predict.shape[1]
    p = predict.reshape(n, c, -1).astype(jnp.float32)
    t = target.reshape(n, c, -1).astype(jnp.float32)
    num = 2.0 * jnp.sum(p * t, axis=-1) + 1.0
    den = jnp.sum(p + t, axis=-1) + 1.0
    dice = jnp.mean(jnp.mean(1.0 - num / den, axis=0))
    log_p = jnp.maximum(jnp.log(p), -100.0)
    log_1mp = jnp.maximum(jnp.log(1.0 - p), -100.0)
    bce = jnp.mean(-(t * log_p + (1.0 - t) * log_1mp))
    return dice + bce


if __name__ == "__main__":
    key = jax.random.PRNGKey(0)
    k1, k2, k3, k4 = jax.random.split(key, 4)

    # Primary (aligned) case: N=2, C=4, 16x16 spatial.
    N, C, H, W = 2, 4, 16, 16
    predict = jax.nn.sigmoid(jax.random.normal(k1, (N, C, H, W), jnp.float32))
    target = (jax.random.uniform(k2, (N, C, H, W), jnp.float32) > 0.5).astype(jnp.float32)
    out = mix_loss(predict, target)
    jax.block_until_ready(out)
    ref = _mix_loss_ref(predict, target)
    assert jnp.allclose(out, ref, rtol=1e-5, atol=1e-5), (out, ref)

    # Non-aligned case: exercises row/lane zero-padding paths.
    N2, C2, H2, W2 = 3, 3, 17, 13
    p_na = jax.nn.sigmoid(jax.random.normal(k3, (N2, C2, H2, W2), jnp.float32))
    t_na = (jax.random.uniform(k4, (N2, C2, H2, W2), jnp.float32) > 0.5).astype(jnp.float32)
    out2 = mix_loss(p_na, t_na)
    jax.block_until_ready(out2)
    ref2 = _mix_loss_ref(p_na, t_na)
    assert jnp.allclose(out2, ref2, rtol=1e-5, atol=1e-5), (out2, ref2)

    print("KERNEL_OK")
</pallas_src>

<mosaic_0001>
module attributes {stable_mosaic.version = 11 : i64} {
  func.func @_mixloss_kernel(%arg0: i32, %arg1: i32, %arg2: memref<8x256xf32, #tpu.memory_space<vmem>>, %arg3: memref<8x256xf32, #tpu.memory_space<vmem>>, %arg4: memref<1x8x128xf32, #tpu.memory_space<vmem>>, %arg5: memref<1x8x128xf32, #tpu.memory_space<vmem>>, %arg6: memref<8x1xf32, #tpu.memory_space<vmem>>, %arg7: memref<8x1xf32, #tpu.memory_space<vmem>>, %arg8: memref<8x1xf32, #tpu.memory_space<vmem>>) attributes {dimension_semantics = [#tpu.dimension_semantics<parallel>, #tpu.dimension_semantics<arbitrary>], iteration_bounds = array<i64: 1, 1>, scalar_prefetch = 0 : i64, scratch_operands = 3 : i64, tpu.core_type = #tpu.core_type<tc>, window_params = [{transform_indices = @transform_0, window_bounds = array<i64: 8, 256>}, {transform_indices = @transform_1, window_bounds = array<i64: 8, 256>}, {transform_indices = @transform_2, window_bounds = array<i64: 1, 8, 128>}, {transform_indices = @transform_3, window_bounds = array<i64: 1, 8, 128>}]} {
    %c0_i32 = arith.constant 0 : i32
    %0 = arith.cmpi eq, %arg1, %c0_i32 : i32
    %1 = arith.extui %0 : i1 to i32
    %c0_i32_0 = arith.constant 0 : i32
    %2 = arith.cmpi ne, %1, %c0_i32_0 : i32
    scf.if %2 {
      %cst_25 = arith.constant 0.000000e+00 : f32
      %40 = vector.broadcast %cst_25 : f32 to vector<8x1xf32>
      %c0_26 = arith.constant 0 : index
      %c0_27 = arith.constant 0 : index
      %41 = vector.load %arg6[%c0_26, %c0_27] : memref<8x1xf32, #tpu.memory_space<vmem>>, vector<8x1xf32>
      tpu.vector_store %arg6[%c0_26, %c0_27], %40 {strides = array<i32>} : memref<8x1xf32, #tpu.memory_space<vmem>>, vector<8x1xf32>,
      %cst_28 = arith.constant 0.000000e+00 : f32
      %42 = vector.broadcast %cst_28 : f32 to vector<8x1xf32>
      %c0_29 = arith.constant 0 : index
      %c0_30 = arith.constant 0 : index
      %43 = vector.load %arg7[%c0_29, %c0_30] : memref<8x1xf32, #tpu.memory_space<vmem>>, vector<8x1xf32>
      tpu.vector_store %arg7[%c0_29, %c0_30], %42 {strides = array<i32>} : memref<8x1xf32, #tpu.memory_space<vmem>>, vector<8x1xf32>,
      %cst_31 = arith.constant 0.000000e+00 : f32
      %44 = vector.broadcast %cst_31 : f32 to vector<8x1xf32>
      %c0_32 = arith.constant 0 : index
      %c0_33 = arith.constant 0 : index
      %45 = vector.load %arg8[%c0_32, %c0_33] : memref<8x1xf32, #tpu.memory_space<vmem>>, vector<8x1xf32>
      tpu.vector_store %arg8[%c0_32, %c0_33], %44 {strides = array<i32>} : memref<8x1xf32, #tpu.memory_space<vmem>>, vector<8x1xf32>,
    } else {
    }
    %c0 = arith.constant 0 : index
    %c0_1 = arith.constant 0 : index
    %3 = vector.load %arg2[%c0, %c0_1] : memref<8x256xf32, #tpu.memory_space<vmem>>, vector<8x256xf32>
    %c0_2 = arith.constant 0 : index
    %c0_3 = arith.constant 0 : index
    %4 = vector.load %arg3[%c0_2, %c0_3] : memref<8x256xf32, #tpu.memory_space<vmem>>, vector<8x256xf32>
    %5 = math.log %3 : vector<8x256xf32>
    %cst = arith.constant -1.000000e+02 : f32
    %6 = vector.broadcast %cst : f32 to vector<8x256xf32>
    %7 = arith.maximumf %5, %6 : vector<8x256xf32>
    %cst_4 = arith.constant 1.000000e+00 : f32
    %8 = vector.broadcast %cst_4 : f32 to vector<8x256xf32>
    %9 = arith.subf %8, %3 : vector<8x256xf32>
    %10 = math.log %9 : vector<8x256xf32>
    %cst_5 = arith.constant -1.000000e+02 : f32
    %11 = vector.broadcast %cst_5 : f32 to vector<8x256xf32>
    %12 = arith.maximumf %10, %11 : vector<8x256xf32>
    %13 = arith.mulf %4, %7 : vector<8x256xf32>
    %cst_6 = arith.constant 1.000000e+00 : f32
    %14 = vector.broadcast %cst_6 : f32 to vector<8x256xf32>
    %15 = arith.subf %14, %4 : vector<8x256xf32>
    %16 = arith.mulf %15, %12 : vector<8x256xf32>
    %17 = arith.addf %13, %16 : vector<8x256xf32>
    %cst_7 = arith.constant 0.000000e+00 : f32
    %18 = vector.broadcast %cst_7 : f32 to vector<8x256xf32>
    %19 = arith.subf %18, %17 : vector<8x256xf32>
    %c0_8 = arith.constant 0 : index
    %c0_9 = arith.constant 0 : index
    %20 = vector.load %arg6[%c0_8, %c0_9] : memref<8x1xf32, #tpu.memory_space<vmem>>, vector<8x1xf32>
    %21 = arith.mulf %3, %4 : vector<8x256xf32>
    %cst_10 = arith.constant dense<0.000000e+00> : vector<8xf32>
    %22 = vector.multi_reduction <add>, %21, %cst_10 [1] : vector<8x256xf32> to vector<8xf32>
    %23 = vector.shape_cast %22 : vector<8xf32> to vector<8x1xf32>
    %24 = arith.addf %20, %23 : vector<8x1xf32>
    %c0_11 = arith.constant 0 : index
    %c0_12 = arith.constant 0 : index
    %25 = vector.load %arg6[%c0_11, %c0_12] : memref<8x1xf32, #tpu.memory_space<vmem>>, vector<8x1xf32>
    tpu.vector_store %arg6[%c0_11, %c0_12], %24 {strides = array<i32>} : memref<8x1xf32, #tpu.memory_space<vmem>>, vector<8x1xf32>,
    %c0_13 = arith.constant 0 : index
    %c0_14 = arith.constant 0 : index
    %26 = vector.load %arg7[%c0_13, %c0_14] : memref<8x1xf32, #tpu.memory_space<vmem>>, vector<8x1xf32>
    %27 = arith.addf %3, %4 : vector<8x256xf32>
    %cst_15 = arith.constant dense<0.000000e+00> : vector<8xf32>
    %28 = vector.multi_reduction <add>, %27, %cst_15 [1] : vector<8x256xf32> to vector<8xf32>
    %29 = vector.shape_cast %28 : vector<8xf32> to vector<8x1xf32>
    %30 = arith.addf %26, %29 : vector<8x1xf32>
    %c0_16 = arith.constant 0 : index
    %c0_17 = arith.constant 0 : index
    %31 = vector.load %arg7[%c0_16, %c0_17] : memref<8x1xf32, #tpu.memory_space<vmem>>, vector<8x1xf32>
    tpu.vector_store %arg7[%c0_16, %c0_17], %30 {strides = array<i32>} : memref<8x1xf32, #tpu.memory_space<vmem>>, vector<8x1xf32>,
    %c0_18 = arith.constant 0 : index
    %c0_19 = arith.constant 0 : index
    %32 = vector.load %arg8[%c0_18, %c0_19] : memref<8x1xf32, #tpu.memory_space<vmem>>, vector<8x1xf32>
    %cst_20 = arith.constant dense<0.000000e+00> : vector<8xf32>
    %33 = vector.multi_reduction <add>, %19, %cst_20 [1] : vector<8x256xf32> to vector<8xf32>
    %34 = vector.shape_cast %33 : vector<8xf32> to vector<8x1xf32>
    %35 = arith.addf %32, %34 : vector<8x1xf32>
    %c0_21 = arith.constant 0 : index
    %c0_22 = arith.constant 0 : index
    %36 = vector.load %arg8[%c0_21, %c0_22] : memref<8x1xf32, #tpu.memory_space<vmem>>, vector<8x1xf32>
    tpu.vector_store %arg8[%c0_21, %c0_22], %35 {strides = array<i32>} : memref<8x1xf32, #tpu.memory_space<vmem>>, vector<8x1xf32>,
    %c0_i32_23 = arith.constant 0 : i32
    %37 = arith.cmpi eq, %arg1, %c0_i32_23 : i32
    %38 = arith.extui %37 : i1 to i32
    %c0_i32_24 = arith.constant 0 : i32
    %39 = arith.cmpi ne, %38, %c0_i32_24 : i32
    scf.if %39 {
      %c0_25 = arith.constant 0 : index
      %c0_26 = arith.constant 0 : index
      %40 = vector.load %arg6[%c0_25, %c0_26] : memref<8x1xf32, #tpu.memory_space<vmem>>, vector<8x1xf32>
      %cst_27 = arith.constant 2.000000e+00 : f32
      %41 = vector.broadcast %cst_27 : f32 to vector<8x1xf32>
      %42 = arith.mulf %41, %40 : vector<8x1xf32>
      %cst_28 = arith.constant 1.000000e+00 : f32
      %43 = vector.broadcast %cst_28 : f32 to vector<8x1xf32>
      %44 = arith.addf %42, %43 : vector<8x1xf32>
      %c0_29 = arith.constant 0 : index
      %c0_30 = arith.constant 0 : index
      %45 = vector.load %arg7[%c0_29, %c0_30] : memref<8x1xf32, #tpu.memory_space<vmem>>, vector<8x1xf32>
      %cst_31 = arith.constant 1.000000e+00 : f32
      %46 = vector.broadcast %cst_31 : f32 to vector<8x1xf32>
      %47 = arith.addf %45, %46 : vector<8x1xf32>
      %48 = arith.divf %44, %47 : vector<8x1xf32>
      %cst_32 = arith.constant 1.000000e+00 : f32
      %49 = vector.broadcast %cst_32 : f32 to vector<8x1xf32>
      %50 = arith.subf %49, %48 : vector<8x1xf32>
      %cst_33 = arith.constant dense<0.000000e+00> : vector<1xf32>
      %51 = vector.multi_reduction <add>, %50, %cst_33 [0] : vector<8x1xf32> to vector<1xf32>
      %52 = vector.shape_cast %51 : vector<1xf32> to vector<1x1xf32>
      %c0_34 = arith.constant 0 : index
      %c0_35 = arith.constant 0 : index
      %53 = vector.load %arg8[%c0_34, %c0_35] : memref<8x1xf32, #tpu.memory_space<vmem>>, vector<8x1xf32>
      %cst_36 = arith.constant dense<0.000000e+00> : vector<1xf32>
      %54 = vector.multi_reduction <add>, %53, %cst_36 [0] : vector<8x1xf32> to vector<1xf32>
      %55 = vector.shape_cast %54 : vector<1xf32> to vector<1x1xf32>
      %56 = vector.shape_cast %52 : vector<1x1xf32> to vector<1x1xf32>
      %57 = vector.broadcast %56 : vector<1x1xf32> to vector<8x128xf32>
      %c0_37 = arith.constant 0 : index
      %c0_38 = arith.constant 0 : index
      %c0_39 = arith.constant 0 : index
      %58 = vector.load %arg4[%c0_37, %c0_38, %c0_39] : memref<1x8x128xf32, #tpu.memory_space<vmem>>, vector<1x8x128xf32>
      %59 = vector.shape_cast %58 : vector<1x8x128xf32> to vector<8x128xf32>
      %60 = vector.shape_cast %57 : vector<8x128xf32> to vector<1x8x128xf32>
      tpu.vector_store %arg4[%c0_37, %c0_38, %c0_39], %60 {strides = array<i32>} : memref<1x8x128xf32, #tpu.memory_space<vmem>>, vector<1x8x128xf32>,
      %61 = vector.shape_cast %55 : vector<1x1xf32> to vector<1x1xf32>
      %62 = vector.broadcast %61 : vector<1x1xf32> to vector<8x128xf32>
      %c0_40 = arith.constant 0 : index
      %c0_41 = arith.constant 0 : index
      %c0_42 = arith.constant 0 : index
      %63 = vector.load %arg5[%c0_40, %c0_41, %c0_42] : memref<1x8x128xf32, #tpu.memory_space<vmem>>, vector<1x8x128xf32>
      %64 = vector.shape_cast %63 : vector<1x8x128xf32> to vector<8x128xf32>
      %65 = vector.shape_cast %62 : vector<8x128xf32> to vector<1x8x128xf32>
      tpu.vector_store %arg5[%c0_40, %c0_41, %c0_42], %65 {strides = array<i32>} : memref<1x8x128xf32, #tpu.memory_space<vmem>>, vector<1x8x128xf32>,
    } else {
    }
    return
  }
  func.func @transform_0(%arg0: i32, %arg1: i32) -> (i32, i32) {
    %c0_i32 = arith.constant 0 : i32
    return %arg0, %arg1 : i32, i32
  }
  func.func @transform_1(%arg0: i32, %arg1: i32) -> (i32, i32) {
    %c0_i32 = arith.constant 0 : i32
    return %arg0, %arg1 : i32, i32
  }
  func.func @transform_2(%arg0: i32, %arg1: i32) -> (i32, i32, i32) {
    %c0_i32 = arith.constant 0 : i32
    %c0_i32_0 = arith.constant 0 : i32
    %c0_i32_1 = arith.constant 0 : i32
    return %arg0, %c0_i32, %c0_i32_0 : i32, i32, i32
  }
  func.func @transform_3(%arg0: i32, %arg1: i32) -> (i32, i32, i32) {
    %c0_i32 = arith.constant 0 : i32
    %c0_i32_0 = arith.constant 0 : i32
    %c0_i32_1 = arith.constant 0 : i32
    return %arg0, %c0_i32, %c0_i32_0 : i32, i32, i32
  }
}

</mosaic_0001>

<bundles_post_ra>
// kernel: mix_loss.1
= control target key start
LH: loop header
LB: loop body
LE: loop exit
PB: predicated region body
PF: predicated region fallthrough
CT: control target
= control target key end

     0   :  { %vm17_vm0 = vcmask 7168   ;;  %v132_v3 = vmov 0.0   ;;  %v133_v36 = vmov 0   ;;  %s180_s0 = inlined_call_operand.vmem [shape: f32[8,256], index: 0, kind: input, shape index: {}]   ;;  %s181_s1 = inlined_call_operand.vmem [shape: f32[8,256], index: 1, kind: input, shape index: {}]   ;;  %s182_s2 = inlined_call_operand.vmem [shape: f32[1,8,128], index: 2, kind: output, shape index: {0}]   ;;  %s183_s3 = inlined_call_operand.vmem [shape: f32[1,8,128], index: 3, kind: output, shape index: {1}]  }
   0x1   :  { %v21_v0 = vld [vmem:[%s180_s0] sm:$0xff]  ;;  %v22_v1 = vld [vmem:[%s180_s0 + $0x8] sm:$0xff]  ;;  %19 = vst.msk [vmem:[#allocation3] sm:$0xff] %vm17_vm0, %v132_v3  ;;  %18 = vst.msk [vmem:[#allocation2] sm:$0xff] %vm17_vm0, %v132_v3  ;;  %120 = vset.pattern.permute.xlu1 %v133_v36  ;;  %121 = vset.pattern.permute.xlu0 %v133_v36 }
   0x2   :  { %v23_v2 = vld [vmem:[%s181_s1] sm:$0xff]  ;;  %20 = vst.msk [vmem:[#allocation4] sm:$0xff] %vm17_vm0, %v132_v3  ;;  %v24_v4 = vld [vmem:[%s181_s1 + $0x8] sm:$0xff]  ;;  %122 = vlog2.f32 %v22_v1  ;;  %v32_v5 = vsub.f32 1.0, %v22_v1  ;;  %v31_v7 = vsub.f32 1.0, %v21_v0 }
   0x3   :  { %v59_v6 = vadd.f32 %v23_v2, %v21_v0  ;;  %v60_v8 = vadd.f32 %v24_v4, %v22_v1  ;;  %124 = vlog2.f32 %v21_v0  ;;  %v50_v9 = vmul.f32 %v23_v2, %v21_v0 }
   0x4   :  { %v51_v10 = vmul.f32 %v24_v4, %v22_v1  ;;  %126 = vlog2.f32 %v31_v7  ;;  %v41_v21 = vsub.f32 1.0, %v23_v2  ;;  %v42_v24 = vsub.f32 1.0, %v24_v4 }
   0x5   :  { %v61_v11 = vadd.f32 %v60_v8, %v59_v6  ;;  %128 = vlog2.f32 %v32_v5 }
   0x6   :  { %v52_v12 = vadd.f32 %v51_v10, %v50_v9 }
   0x7   :  { %62 = vadd.xlane.f32.xlu0 %v61_v11 }
   0x8   :  { %v58_v37 = vld [vmem:[#allocation3] sm:$0xff]  ;;  %v49_v40 = vld [vmem:[#allocation2] sm:$0xff] }
   0x9   :  { %v66_v47 = vld [vmem:[#allocation4] sm:$0xff] }
   0xb   :  { %53 = vadd.xlane.f32.xlu0 %v52_v12 }
   0xf   :  { %v123_v13 = vpop.eup %122 }
  0x10   :  { %v125_v14 = vpop.eup %124  ;;  %v28_v15 = vmul.f32 0.6931472, %v123_v13 }
  0x11   :  { %v127_v16 = vpop.eup %126  ;;  %v26_v17 = vmul.f32 0.6931472, %v125_v14 }
  0x12   :  { %v129_v18 = vpop.eup %128  ;;  %v30_v19 = vmax.f32 %v28_v15, -100.0  ;;  %v34_v20 = vmul.f32 0.6931472, %v127_v16 }
  0x13   :  { %v29_v22 = vmax.f32 %v26_v17, -100.0  ;;  %v36_v23 = vmul.f32 0.6931472, %v129_v18 }
  0x14   :  { %v37_v25 = vmax.f32 %v34_v20, -100.0  ;;  %v40_v28 = vmul.f32 %v30_v19, %v24_v4 }
  0x15   :  { %v38_v26 = vmax.f32 %v36_v23, -100.0  ;;  %v39_v27 = vmul.f32 %v29_v22, %v23_v2 }
  0x16   :  { %v43_v29 = vmul.f32 %v41_v21, %v37_v25 }
  0x17   :  { %v44_v30 = vmul.f32 %v42_v24, %v38_v26 }
  0x18   :  { %v45_v31 = vadd.f32 %v43_v29, %v39_v27 }
  0x19   :  { %v46_v32 = vadd.f32 %v44_v30, %v40_v28 }
  0x1a   :  { %v47_v33 = vsub.f32 0.0, %v45_v31 }
  0x1b   :  { %v48_v34 = vsub.f32 0.0, %v46_v32 }
  0x1d   :  { %v67_v35 = vadd.f32 %v48_v34, %v47_v33 }
  0x1f   :  { %68 = vadd.xlane.f32.xlu1 %v67_v35 }
  0x90   :  { %v63_v38 = vpop.xlane.xlu0 %62 }
  0x91   :  { %v64_v39 = vadd.f32 %v63_v38, %v58_v37 }
  0x93   :  { %65 = vst.msk [vmem:[#allocation3] sm:$0xff] %vm17_vm0, %v64_v39 }
  0x94   :  { %v54_v41 = vpop.xlane.xlu0 %53 }
  0x95   :  { %v55_v42 = vadd.f32 %v54_v41, %v49_v40 }
  0x97   :  { %57 = vst.msk [vmem:[#allocation2] sm:$0xff] %vm17_vm0, %v55_v42 }
  0x9a   :  { %v78_v43 = vld [vmem:[#allocation3] sm:$0xff] }
  0x9b   :  { %v79_v44 = vadd.f32 1.0, %v78_v43 }
  0x9d   :  { %130 = vrcp.f32 %v79_v44 }
  0x9e   :  { %v75_v45 = vld [vmem:[#allocation2] sm:$0xff] }
  0x9f   :  { %v76_v46 = vmul.f32 2.0, %v75_v45 }
  0xa1   :  { %v77_v48 = vadd.f32 1.0, %v76_v46 }
  0xa8   :  { %v69_v49 = vpop.xlane.xlu1 %68 }
  0xa9   :  { %v70_v50 = vadd.f32 %v69_v49, %v66_v47 }
  0xaa   :  { %v131_v51 = vpop.eup %130 }
  0xab   :  { %71 = vst.msk [vmem:[#allocation4] sm:$0xff] %vm17_vm0, %v70_v50  ;;  %v81_v52 = vmul.f32 %v131_v51, %v77_v48 }
  0xad   :  { %v82_v53 = vsub.f32 1.0, %v81_v52 }
  0xaf   :  { %v83_v54 = vsel %vm17_vm0, %v82_v53, 0.0 }
  0xb0   :  { %v84_v55 = vrot.slane %v83_v54, 4 }
  0xb2   :  { %v85_v56 = vadd.f32 %v84_v55, %v83_v54  ;;  %v90_v57 = vld [vmem:[#allocation4] sm:$0xff] }
  0xb3   :  { %v91_v58 = vsel %vm17_vm0, %v90_v57, 0.0 }
  0xb4   :  { %v86_v59 = vrot.slane %v85_v56, 2  ;;  %v92_v60 = vrot.slane %v91_v58, 4 }
  0xb6   :  { %v87_v61 = vadd.f32 %v86_v59, %v85_v56  ;;  %v93_v62 = vadd.f32 %v92_v60, %v91_v58 }
  0xb8   :  { %v88_v63 = vrot.slane %v87_v61, 1  ;;  %v94_v0 = vrot.slane %v93_v62, 2 }
  0xba   :  { %v89_v1 = vadd.f32 %v88_v63, %v87_v61  ;;  %v95_v2 = vadd.f32 %v94_v0, %v93_v62 }
  0xbc   :  { %100 = vperm.xlu1 %120, %v89_v1   ;;  %v96_v3 = vrot.slane %v95_v2, 1 }
  0xbe   :  { %v97_v4 = vadd.f32 %v96_v3, %v95_v2 }
  0xc0   :  { %106 = vperm.xlu0 %121, %v97_v4  }
 0x137   :  { %v101_v5 = vpop.permute.xlu1 %100 }
 0x138   :  { %103 = vst [vmem:[%s182_s2] sm:$0xff] %v101_v5 }
 0x13b   :  { %v107_v6 = vpop.permute.xlu0 %106 }
 0x13c   :  { %109 = vst [vmem:[%s183_s3] sm:$0xff] %v107_v6 }

</bundles_post_ra>
